<compile_context>
chip_gen: v7x
topology: tpu7x:2x2x1
jax: 0.10.0
libtpu: 0.0.40
codegen_flags: <defaults>
</compile_context>

<pallas_src>
import functools

import jax
import jax.numpy as jnp
from jax.experimental import pallas as pl
from jax.experimental.pallas import tpu as pltpu


_SUBLANE = 16   # bf16 sublane granularity (also satisfies f32's 8)
_LANE = 128     # lane width


def _round_up(x, m):
    return ((x + m - 1) // m) * m


def _pnet_kernel(x_ref, w1_ref, b1_ref, w2_ref, b2_ref, w3_ref, b3_ref, out_ref,
                 *, valid_actions):
    bf16 = jnp.bfloat16

    # fc1 + relu  (bf16 operands, f32 accumulate, f32 elementwise)
    h1 = jnp.dot(x_ref[...], w1_ref[...], preferred_element_type=jnp.float32)
    h1 = jnp.maximum(h1 + b1_ref[...], 0.0)

    # fc2 + relu
    h2 = jnp.dot(h1.astype(bf16), w2_ref[...], preferred_element_type=jnp.float32)
    h2 = jnp.maximum(h2 + b2_ref[...], 0.0)

    # fc3
    logits = jnp.dot(h2.astype(bf16), w3_ref[...], preferred_element_type=jnp.float32)
    logits = logits + b3_ref[...]

    # Mask the lane-padding columns so they contribute nothing to the softmax.
    a_pad = out_ref.shape[-1]
    if valid_actions < a_pad:
        col = jax.lax.broadcasted_iota(jnp.int32, logits.shape, 1)
        logits = jnp.where(col < valid_actions, logits, -jnp.inf)

    # Numerically-stable softmax; reciprocal on the (otherwise idle) EUP.
    m = jnp.max(logits, axis=-1, keepdims=True)
    e = jnp.exp(logits - m)
    denom = jnp.sum(e, axis=-1, keepdims=True)
    out_ref[...] = (e * pl.reciprocal(denom, approx=True)).astype(out_ref.dtype)


@functools.partial(jax.jit, static_argnames=("block_b",))
def p_net_forward(x, params, block_b=256):
    """Fused forward pass for P_net.

    x:       (B, state_dim) float array
    params:  dict with w1 (S,256), b1 (1,256), w2 (256,128), b2 (1,128),
             w3 (128,A), b3 (1,A)  (any float dtype; cast internally)
    returns: (B, A) softmax probabilities, float32

    Note: for single-digit batches the fixed kernel-launch / pipeline overhead
    dominates (~1 MFLOP total work); the kernel pays off once B is in the
    hundreds. It is still correct for any B.
    """
    B, S = x.shape
    H1 = params["w1"].shape[1]
    H2 = params["w2"].shape[1]
    A = params["w3"].shape[1]

    # ---- choose the batch tile -------------------------------------------
    # Large tiles keep MXU rows busy and amortize the ~0.35us/step overhead;
    # cap at ceil(B/2) so the parallel grid keeps >= 2 steps (both v7x TCs).
    bb = max(_SUBLANE, _round_up(min(block_b, pl.cdiv(B, 2)), _SUBLANE))
    B_pad = _round_up(B, bb)
    grid = (B_pad // bb,)

    # ---- lane-pad the action dim for lane-dense (unmasked) output stores --
    A_pad = _round_up(A, _LANE)

    bf16 = jnp.bfloat16
    f32 = jnp.float32

    x_p = x.astype(bf16)
    if B_pad != B:
        x_p = jnp.pad(x_p, ((0, B_pad - B), (0, 0)))

    w1 = params["w1"].astype(bf16)
    w2 = params["w2"].astype(bf16)
    w3 = params["w3"].astype(bf16)
    b1 = params["b1"].astype(f32)
    b2 = params["b2"].astype(f32)
    b3 = params["b3"].astype(f32)
    if A_pad != A:
        w3 = jnp.pad(w3, ((0, 0), (0, A_pad - A)))
        b3 = jnp.pad(b3, ((0, 0), (0, A_pad - A)))

    out = pl.pallas_call(
        functools.partial(_pnet_kernel, valid_actions=A),
        out_shape=jax.ShapeDtypeStruct((B_pad, A_pad), f32),
        grid_spec=pltpu.PrefetchScalarGridSpec(
            num_scalar_prefetch=0,
            grid=grid,
            in_specs=[
                # batch tile of activations
                pl.BlockSpec((bb, S), lambda i: (i, 0)),
                # weights / biases: grid-invariant blocks (not re-DMA'd per step)
                pl.BlockSpec((S, H1), lambda i: (0, 0)),
                pl.BlockSpec((1, H1), lambda i: (0, 0)),
                pl.BlockSpec((H1, H2), lambda i: (0, 0)),
                pl.BlockSpec((1, H2), lambda i: (0, 0)),
                pl.BlockSpec((H2, A_pad), lambda i: (0, 0)),
                pl.BlockSpec((1, A_pad), lambda i: (0, 0)),
            ],
            out_specs=pl.BlockSpec((bb, A_pad), lambda i: (i, 0)),
        ),
        compiler_params=pltpu.CompilerParams(
            dimension_semantics=("parallel",),
        ),
    )(x_p, w1, b1, w2, b2, w3, b3)

    return out[:B, :A]


def init_params(key, state_dim, action_dim):
    """Deterministic init mimicking PyTorch Linear default (+/- 1/sqrt(fan_in))."""
    ks = jax.random.split(key, 6)

    def lin(kw, kb, fan_in, fan_out):
        bound = 1.0 / jnp.sqrt(fan_in)
        w = jax.random.uniform(kw, (fan_in, fan_out), jnp.float32, -bound, bound)
        b = jax.random.uniform(kb, (1, fan_out), jnp.float32, -bound, bound)
        return w, b

    w1, b1 = lin(ks[0], ks[1], state_dim, 256)
    w2, b2 = lin(ks[2], ks[3], 256, 128)
    w3, b3 = lin(ks[4], ks[5], 128, action_dim)
    return {"w1": w1, "b1": b1, "w2": w2, "b2": b2, "w3": w3, "b3": b3}


def p_net_reference_f32(x, params):
    """Pure-f32 JAX reference (the PyTorch semantics)."""
    h1 = jnp.maximum(x @ params["w1"] + params["b1"], 0.0)
    h2 = jnp.maximum(h1 @ params["w2"] + params["b2"], 0.0)
    logits = h2 @ params["w3"] + params["b3"]
    return jax.nn.softmax(logits, axis=-1)


def p_net_reference_mixed(x, params):
    """Reference matching the kernel's bf16-operand / f32-accumulate math."""
    bf16 = jnp.bfloat16
    h1 = jnp.dot(x.astype(bf16), params["w1"].astype(bf16),
                 preferred_element_type=jnp.float32) + params["b1"]
    h1 = jnp.maximum(h1, 0.0)
    h2 = jnp.dot(h1.astype(bf16), params["w2"].astype(bf16),
                 preferred_element_type=jnp.float32) + params["b2"]
    h2 = jnp.maximum(h2, 0.0)
    logits = jnp.dot(h2.astype(bf16), params["w3"].astype(bf16),
                     preferred_element_type=jnp.float32) + params["b3"]
    return jax.nn.softmax(logits, axis=-1)


if __name__ == "__main__":
    key = jax.random.PRNGKey(0)
    k_param, k_x = jax.random.split(key)

    batch = 8
    state_dim = 32
    action_dim = 8

    params = init_params(k_param, state_dim, action_dim)
    x = jax.random.normal(k_x, (batch, state_dim), dtype=jnp.float32)

    out = p_net_forward(x, params)           # default block_b=256 (auto-capped)
    out = jax.block_until_ready(out)

    assert out.shape == (batch, action_dim)

    # Match against a reference using the same mixed precision (tight), and
    # against the pure-f32 PyTorch semantics (loose, bf16 matmul operands).
    ref_mixed = p_net_reference_mixed(x, params)
    ref_f32 = p_net_reference_f32(x, params)
    assert jnp.allclose(out, ref_mixed, atol=5e-3, rtol=5e-3), "mismatch vs mixed ref"
    assert jnp.allclose(out, ref_f32, atol=5e-2, rtol=5e-2), "mismatch vs f32 ref"
    # rows of softmax should sum to ~1 (approx reciprocal => looser tolerance)
    assert jnp.allclose(jnp.sum(out, axis=-1), 1.0, atol=5e-3)

    print("KERNEL_OK")
</pallas_src>

<mosaic_0001>
module attributes {stable_mosaic.version = 11 : i64} {
  func.func @_pnet_kernel(%arg0: i32, %arg1: memref<16x32xbf16, #tpu.memory_space<vmem>>, %arg2: memref<32x256xbf16, #tpu.memory_space<vmem>>, %arg3: memref<1x256xf32, #tpu.memory_space<vmem>>, %arg4: memref<256x128xbf16, #tpu.memory_space<vmem>>, %arg5: memref<1x128xf32, #tpu.memory_space<vmem>>, %arg6: memref<128x128xbf16, #tpu.memory_space<vmem>>, %arg7: memref<1x128xf32, #tpu.memory_space<vmem>>, %arg8: memref<16x128xf32, #tpu.memory_space<vmem>>) attributes {dimension_semantics = [#tpu.dimension_semantics<parallel>], iteration_bounds = array<i64: 1>, scalar_prefetch = 0 : i64, scratch_operands = 0 : i64, tpu.core_type = #tpu.core_type<tc>, window_params = [{transform_indices = @transform_0, window_bounds = array<i64: 16, 32>}, {pipeline_mode = #tpu.pipeline_mode<synchronous>, transform_indices = @transform_1, window_bounds = array<i64: 32, 256>}, {pipeline_mode = #tpu.pipeline_mode<synchronous>, transform_indices = @transform_2, window_bounds = array<i64: 1, 256>}, {pipeline_mode = #tpu.pipeline_mode<synchronous>, transform_indices = @transform_3, window_bounds = array<i64: 256, 128>}, {pipeline_mode = #tpu.pipeline_mode<synchronous>, transform_indices = @transform_4, window_bounds = array<i64: 1, 128>}, {pipeline_mode = #tpu.pipeline_mode<synchronous>, transform_indices = @transform_5, window_bounds = array<i64: 128, 128>}, {pipeline_mode = #tpu.pipeline_mode<synchronous>, transform_indices = @transform_6, window_bounds = array<i64: 1, 128>}, {transform_indices = @transform_7, window_bounds = array<i64: 16, 128>}]} {
    %c0 = arith.constant 0 : index
    %c0_0 = arith.constant 0 : index
    %0 = vector.load %arg1[%c0, %c0_0] : memref<16x32xbf16, #tpu.memory_space<vmem>>, vector<16x32xbf16>
    %c0_1 = arith.constant 0 : index
    %c0_2 = arith.constant 0 : index
    %1 = vector.load %arg2[%c0_1, %c0_2] : memref<32x256xbf16, #tpu.memory_space<vmem>>, vector<32x256xbf16>
    %cst = arith.constant dense<0.000000e+00> : vector<16x256xf32>
    %2 = tpu.matmul %0, %1, %cst {dimension_numbers = #tpu.dot_dimension_numbers<[1], [0], [0], [1], [0, 0, 1, 1], [], []>} : vector<16x32xbf16>, vector<32x256xbf16>, vector<16x256xf32> -> vector<16x256xf32>
    %c0_3 = arith.constant 0 : index
    %c0_4 = arith.constant 0 : index
    %3 = vector.load %arg3[%c0_3, %c0_4] : memref<1x256xf32, #tpu.memory_space<vmem>>, vector<1x256xf32>
    %4 = vector.broadcast %3 : vector<1x256xf32> to vector<16x256xf32>
    %5 = arith.addf %2, %4 : vector<16x256xf32>
    %cst_5 = arith.constant 0.000000e+00 : f32
    %6 = vector.broadcast %cst_5 : f32 to vector<16x256xf32>
    %7 = arith.maximumf %5, %6 : vector<16x256xf32>
    %8 = arith.truncf %7 : vector<16x256xf32> to vector<16x256xbf16>
    %c0_6 = arith.constant 0 : index
    %c0_7 = arith.constant 0 : index
    %9 = vector.load %arg4[%c0_6, %c0_7] : memref<256x128xbf16, #tpu.memory_space<vmem>>, vector<256x128xbf16>
    %cst_8 = arith.constant dense<0.000000e+00> : vector<16x128xf32>
    %10 = tpu.matmul %8, %9, %cst_8 {dimension_numbers = #tpu.dot_dimension_numbers<[1], [0], [0], [1], [0, 0, 1, 1], [], []>} : vector<16x256xbf16>, vector<256x128xbf16>, vector<16x128xf32> -> vector<16x128xf32>
    %c0_9 = arith.constant 0 : index
    %c0_10 = arith.constant 0 : index
    %11 = vector.load %arg5[%c0_9, %c0_10] : memref<1x128xf32, #tpu.memory_space<vmem>>, vector<1x128xf32>
    %12 = vector.broadcast %11 : vector<1x128xf32> to vector<16x128xf32>
    %13 = arith.addf %10, %12 : vector<16x128xf32>
    %cst_11 = arith.constant 0.000000e+00 : f32
    %14 = vector.broadcast %cst_11 : f32 to vector<16x128xf32>
    %15 = arith.maximumf %13, %14 : vector<16x128xf32>
    %16 = arith.truncf %15 : vector<16x128xf32> to vector<16x128xbf16>
    %c0_12 = arith.constant 0 : index
    %c0_13 = arith.constant 0 : index
    %17 = vector.load %arg6[%c0_12, %c0_13] : memref<128x128xbf16, #tpu.memory_space<vmem>>, vector<128x128xbf16>
    %cst_14 = arith.constant dense<0.000000e+00> : vector<16x128xf32>
    %18 = tpu.matmul %16, %17, %cst_14 {dimension_numbers = #tpu.dot_dimension_numbers<[1], [0], [0], [1], [0, 0, 1, 1], [], []>} : vector<16x128xbf16>, vector<128x128xbf16>, vector<16x128xf32> -> vector<16x128xf32>
    %c0_15 = arith.constant 0 : index
    %c0_16 = arith.constant 0 : index
    %19 = vector.load %arg7[%c0_15, %c0_16] : memref<1x128xf32, #tpu.memory_space<vmem>>, vector<1x128xf32>
    %20 = vector.broadcast %19 : vector<1x128xf32> to vector<16x128xf32>
    %21 = arith.addf %18, %20 : vector<16x128xf32>
    %22 = tpu.iota {dimensions = array<i32: 1>} : vector<16x128xi32>
    %c8_i32 = arith.constant 8 : i32
    %23 = vector.broadcast %c8_i32 : i32 to vector<16x128xi32>
    %24 = arith.cmpi slt, %22, %23 : vector<16x128xi32>
    %cst_17 = arith.constant 0xFF800000 : f32
    %25 = vector.broadcast %cst_17 : f32 to vector<16x128xf32>
    %26 = arith.select %24, %21, %25 : vector<16x128xi1>, vector<16x128xf32>
    %cst_18 = arith.constant dense<0xFF800000> : vector<16xf32>
    %27 = vector.multi_reduction <maximumf>, %26, %cst_18 [1] : vector<16x128xf32> to vector<16xf32>
    %28 = vector.shape_cast %27 : vector<16xf32> to vector<16x1xf32>
    %29 = vector.broadcast %28 : vector<16x1xf32> to vector<16x128xf32>
    %30 = arith.subf %26, %29 : vector<16x128xf32>
    %31 = math.exp %30 : vector<16x128xf32>
    %cst_19 = arith.constant dense<0.000000e+00> : vector<16xf32>
    %32 = vector.multi_reduction <add>, %31, %cst_19 [1] : vector<16x128xf32> to vector<16xf32>
    %33 = vector.shape_cast %32 : vector<16xf32> to vector<16x1xf32>
    %34 = tpu.reciprocal %33 {approx = true} : vector<16x1xf32> -> vector<16x1xf32>
    %35 = vector.broadcast %34 : vector<16x1xf32> to vector<16x128xf32>
    %36 = arith.mulf %31, %35 : vector<16x128xf32>
    %c0_20 = arith.constant 0 : index
    %c0_21 = arith.constant 0 : index
    %37 = vector.load %arg8[%c0_20, %c0_21] : memref<16x128xf32, #tpu.memory_space<vmem>>, vector<16x128xf32>
    tpu.vector_store %arg8[%c0_20, %c0_21], %36 {strides = array<i32>} : memref<16x128xf32, #tpu.memory_space<vmem>>, vector<16x128xf32>,
    return
  }
  func.func @transform_0(%arg0: i32) -> (i32, i32) {
    %c0_i32 = arith.constant 0 : i32
    %c0_i32_0 = arith.constant 0 : i32
    return %arg0, %c0_i32 : i32, i32
  }
  func.func @transform_1(%arg0: i32) -> (i32, i32) {
    %c0_i32 = arith.constant 0 : i32
    %c0_i32_0 = arith.constant 0 : i32
    %c0_i32_1 = arith.constant 0 : i32
    return %c0_i32, %c0_i32_0 : i32, i32
  }
  func.func @transform_2(%arg0: i32) -> (i32, i32) {
    %c0_i32 = arith.constant 0 : i32
    %c0_i32_0 = arith.constant 0 : i32
    %c0_i32_1 = arith.constant 0 : i32
    return %c0_i32, %c0_i32_0 : i32, i32
  }
  func.func @transform_3(%arg0: i32) -> (i32, i32) {
    %c0_i32 = arith.constant 0 : i32
    %c0_i32_0 = arith.constant 0 : i32
    %c0_i32_1 = arith.constant 0 : i32
    return %c0_i32, %c0_i32_0 : i32, i32
  }
  func.func @transform_4(%arg0: i32) -> (i32, i32) {
    %c0_i32 = arith.constant 0 : i32
    %c0_i32_0 = arith.constant 0 : i32
    %c0_i32_1 = arith.constant 0 : i32
    return %c0_i32, %c0_i32_0 : i32, i32
  }
  func.func @transform_5(%arg0: i32) -> (i32, i32) {
    %c0_i32 = arith.constant 0 : i32
    %c0_i32_0 = arith.constant 0 : i32
    %c0_i32_1 = arith.constant 0 : i32
    return %c0_i32, %c0_i32_0 : i32, i32
  }
  func.func @transform_6(%arg0: i32) -> (i32, i32) {
    %c0_i32 = arith.constant 0 : i32
    %c0_i32_0 = arith.constant 0 : i32
    %c0_i32_1 = arith.constant 0 : i32
    return %c0_i32, %c0_i32_0 : i32, i32
  }
  func.func @transform_7(%arg0: i32) -> (i32, i32) {
    %c0_i32 = arith.constant 0 : i32
    %c0_i32_0 = arith.constant 0 : i32
    return %arg0, %c0_i32 : i32, i32
  }
}

</mosaic_0001>

<bundles_post_ra>
// kernel: p_net_forward.1
= control target key start
LH: loop header
LB: loop body
LE: loop exit
PB: predicated region body
PF: predicated region fallthrough
CT: control target
= control target key end

     0   :  { %v568_v1 = vmov 0   ;;  %vm70_vm0 = vcmask 261120   ;;  %v569_v22 = vmov 0.0   ;;  %v35_v28 = vlaneseq  ;;  %s713_s1 = inlined_call_operand.vmem [shape: bf16[32,256], index: 1, kind: input, shape index: {}]   ;;  %s714_s0 = inlined_call_operand.vmem [shape: bf16[16,32], index: 0, kind: input, shape index: {}]   ;;  %s715_s3 = inlined_call_operand.vmem [shape: bf16[256,128], index: 3, kind: input, shape index: {}]   ;;  %s716_s5 = inlined_call_operand.vmem [shape: bf16[128,128], index: 5, kind: input, shape index: {}]   ;;  %s717_s2 = inlined_call_operand.vmem [shape: f32[1,256], index: 2, kind: input, shape index: {}]   ;;  %s718_s4 = inlined_call_operand.vmem [shape: f32[1,128], index: 4, kind: input, shape index: {}]   ;;  %s719_s6 = inlined_call_operand.vmem [shape: f32[1,128], index: 6, kind: input, shape index: {}]   ;;  %s720_s7 = inlined_call_operand.vmem [shape: f32[16,128], index: 7, kind: output, shape index: {}]  }
   0x1   :  { %v529_v0 = vld [vmem:[%s713_s1 + $0x4] ss:$8 sps:$4 sm:$0xff]   ;;  %106 = vmatprep.mubr.bf16.mxu0 %v568_v1  ;;  %v531_v2 = vld [vmem:[%s713_s1] ss:$8 sps:$4 sm:$0xff]   ;;  %v532_v3 = vld [vmem:[%s713_s1 + $0x14] ss:$8 sps:$4 sm:$0xff]  }
   0x2   :  { %74 = vmatprep.subr.bf16.mxu0 %v529_v0  ;;  %v534_v4 = vld [vmem:[%s713_s1 + $0x10] ss:$8 sps:$4 sm:$0xff]   ;;  %v535_v5 = vld [vmem:[%s714_s0] sm:$0xff]   ;;  %v538_v8 = vld [vmem:[%s715_s3 + $0x48] sm:$0xff]   ;;  %v36_v29 = vshrl.u32 %v35_v28, 7  ;;  %vm570_vm1 = vmmov 0  }
   0x3   :  { %75 = vmatpush1.bf16.msra.mxu0 %v531_v2  ;;  %v536_v6 = vld [vmem:[%s715_s3 + $0x40] sm:$0xff]   ;;  %v539_v9 = vld [vmem:[%s715_s3 + $0x8] sm:$0xff]   ;;  %v540_v10 = vld [vmem:[%s715_s3 + $0x50] sm:$0xff]   ;;  %v415_v0 = vand.u32 127, %v35_v28 }
   0x4   :  { %76 = vmatprep.subr.bf16.mxu0 %v532_v3  ;;  %v537_v7 = vld [vmem:[%s715_s3] sm:$0xff]   ;;  %475 = vmatprep.subr.bf16.mxu1 %v536_v6  ;;  %v541_v11 = vld [vmem:[%s715_s3 + $0x10] sm:$0xff]   ;;  %v542_v12 = vld [vmem:[%s715_s3 + $0x58] sm:$0xff]   ;;  %v37_v30 = vsub.s32 0, %v36_v29  ;;  %v41_v32 = vsub.s32 1, %v36_v29 }
   0x5   :  { %476 = vmatpush3.bf16.msra.mxu1 %v537_v7  ;;  %v543_v13 = vld [vmem:[%s715_s3 + $0x18] sm:$0xff]   ;;  %v544_v14 = vld [vmem:[%s715_s3 + $0x60] sm:$0xff]   ;;  %v546_v16 = vld [vmem:[%s715_s3 + $0x68] sm:$0xff]   ;;  %vm416_vm2 = vcmp.lt.s32.totalorder %v415_v0, 8 }
   0x6   :  { %477 = vmatprep.subr.bf16.mxu1 %v538_v8  ;;  %v545_v15 = vld [vmem:[%s715_s3 + $0x20] sm:$0xff]   ;;  %v547_v17 = vld [vmem:[%s715_s3 + $0x28] sm:$0xff]   ;;  %v548_v18 = vld [vmem:[%s715_s3 + $0x70] sm:$0xff]  }
   0x7   :  { %77 = vmatpush1.bf16.msra.mxu0 %v534_v4  ;;  %v549_v19 = vld [vmem:[%s715_s3 + $0x30] sm:$0xff]   ;;  %v550_v20 = vld [vmem:[%s715_s3 + $0x78] sm:$0xff]   ;;  %v552_v23 = vld [vmem:[%s716_s5] sm:$0xff]  }
   0x8   :  { %v551_v21 = vld [vmem:[%s715_s3 + $0x38] sm:$0xff]   ;;  %506 = vmatprep.subr.bf16.mxu0 %v569_v22  ;;  %v553_v24 = vld [vmem:[%s716_s5 + $0x8] sm:$0xff]   ;;  %v554_v25 = vld [vmem:[%s716_s5 + $0x10] sm:$0xff]  }
   0x9   :  { %478 = vmatpush3.bf16.msra.mxu1 %v539_v9  ;;  %v555_v26 = vld [vmem:[%s716_s5 + $0x18] sm:$0xff]   ;;  %v556_v27 = vld [vmem:[%s716_s5 + $0x20] sm:$0xff]   ;;  %v557_v49 = vld [vmem:[%s716_s5 + $0x28] sm:$0xff]  }
   0xa   :  { %448 = vmatmul.mubr.msk.bf16.vlgmr.msra.gmra.mrb[0].mxu0 %vm70_vm0, %v535_v5  ;;  %479 = vmatprep.subr.bf16.mxu1 %v540_v10  ;;  %v33_v31 = vld [vmem:[%s717_s2] sm:$0x3]  ;;  %v558_v50 = vld [vmem:[%s716_s5 + $0x30] sm:$0xff]   ;;  %v559_v51 = vld [vmem:[%s716_s5 + $0x38] sm:$0xff]  }
   0xb   :  { %507 = vmatpush3.bf16.msra.mxu0 %v552_v23  ;;  %v38_v33 = vrot.slane %v33_v31, %v37_v30  ;;  %v42_v34 = vrot.slane %v33_v31, %v41_v32  ;;  %522 = vmatprep.mubr.msk.bf16.mxu0 %vm570_vm1, %v569_v22  ;;  %v449_v53 = vld [vmem:[%s718_s4] ss:$0 sm:$0xff] }
   0xc   :  { %508 = vmatprep.subr.bf16.mxu0 %v569_v22  ;;  %v466_v1 = vld [vmem:[%s719_s6] ss:$0 sm:$0xff] }
   0xd   :  { %480 = vmatpush3.bf16.msra.mxu1 %v541_v11 }
   0xe   :  { %481 = vmatprep.subr.bf16.mxu1 %v542_v12 }
   0xf   :  { %509 = vmatpush3.bf16.msra.mxu0 %v553_v24 }
  0x10   :  { %510 = vmatprep.subr.bf16.mxu0 %v569_v22 }
  0x11   :  { %482 = vmatpush3.bf16.msra.mxu1 %v543_v13 }
  0x12   :  { %483 = vmatprep.subr.bf16.mxu1 %v544_v14 }
  0x13   :  { %511 = vmatpush3.bf16.msra.mxu0 %v554_v25 }
  0x14   :  { %512 = vmatprep.subr.bf16.mxu0 %v569_v22 }
  0x15   :  { %484 = vmatpush3.bf16.msra.mxu1 %v545_v15 }
  0x16   :  { %485 = vmatprep.subr.bf16.mxu1 %v546_v16 }
  0x17   :  { %513 = vmatpush3.bf16.msra.mxu0 %v555_v26 }
  0x18   :  { %514 = vmatprep.subr.bf16.mxu0 %v569_v22 }
  0x19   :  { %486 = vmatpush3.bf16.msra.mxu1 %v547_v17 }
  0x1a   :  { %487 = vmatprep.subr.bf16.mxu1 %v548_v18 }
  0x1b   :  { %515 = vmatpush3.bf16.msra.mxu0 %v556_v27 }
  0x1c   :  { %516 = vmatprep.subr.bf16.mxu0 %v569_v22 }
  0x1d   :  { %488 = vmatpush3.bf16.msra.mxu1 %v549_v19 }
  0x1e   :  { %489 = vmatprep.subr.bf16.mxu1 %v550_v20 }
  0x1f   :  { %517 = vmatpush3.bf16.msra.mxu0 %v557_v49 }
  0x20   :  { %518 = vmatprep.subr.bf16.mxu0 %v569_v22 }
  0x21   :  { %490 = vmatpush3.bf16.msra.mxu1 %v551_v21 }
  0x23   :  { %519 = vmatpush3.bf16.msra.mxu0 %v558_v50 }
  0x24   :  { %520 = vmatprep.subr.bf16.mxu0 %v569_v22 }
  0x27   :  { %521 = vmatpush3.bf16.msra.mxu0 %v559_v51 }
  0xdd   :  { %v108_v35 = vpop.f32.mrb[0].mxu0 }
  0xde   :  { %v109_v36 = vadd.f32 %v108_v35, %v38_v33  ;;  %v110_v37 = vpop.f32.mrb[1].mxu0 }
  0xdf   :  { %v111_v38 = vadd.f32 %v110_v37, %v42_v34  ;;  %v112_v39 = vpop.f32.mrb[2].mxu0 }
  0xe0   :  { %v113_v40 = vadd.f32 %v112_v39, %v38_v33  ;;  %v114_v41 = vpop.f32.mrb[3].mxu0  ;;  %v117_v43 = vmax.f32 %v109_v36, 0.0 }
  0xe1   :  { %v115_v42 = vadd.f32 %v114_v41, %v42_v34  ;;  %v118_v45 = vmax.f32 %v111_v38, 0.0 }
  0xe2   :  { %v119_v44 = vmax.f32 %v113_v40, 0.0 }
  0xe3   :  { %v120_v46 = vmax.f32 %v115_v42, 0.0 }
  0xe4   :  { %v121_v47 = vpack.c.bf16 %v119_v44, %v117_v43 }
  0xe5   :  { %v122_v48 = vpack.c.bf16 %v120_v46, %v118_v45 }
  0xe7   :  { %290 = vmatprep.mubr.bf16.mxu1 %v122_v48 }
  0xe8   :  { %291 = vmatmul.mubr.bf16.vlgmr.msra.gmra.mrb[0].mxu1 %v121_v47 }
 0x1bb   :  { %v491_v52 = vpop.f32.mrb[0].mxu1 }
 0x1bc   :  { %v492_v54 = vpop.f32.mrb[1].mxu1 }
 0x1bd   :  { %v493_v55 = vadd.f32 %v492_v54, %v491_v52  ;;  %v494_v56 = vpop.f32.mrb[2].mxu1 }
 0x1be   :  { %v495_v57 = vpop.f32.mrb[3].mxu1 }
 0x1bf   :  { %v293_v58 = vadd.f32 %v493_v55, %v449_v53  ;;  %v496_v59 = vadd.f32 %v495_v57, %v494_v56 }
 0x1c1   :  { %v296_v60 = vadd.f32 %v496_v59, %v449_v53  ;;  %v299_v61 = vmax.f32 %v293_v58, 0.0 }
 0x1c3   :  { %v300_v62 = vmax.f32 %v296_v60, 0.0 }
 0x1c5   :  { %v301_v63 = vpack.c.bf16 %v300_v62, %v299_v61 }
 0x1c7   :  { %523 = vmatmul.mubr.bf16.vlgmr.msra.gmra.mrb[4].mxu0 %v301_v63 }
 0x29a   :  { %v407_v2 = vpop.f32.mrb[4].mxu0 }
 0x29b   :  { %v408_v3 = vadd.f32 %v466_v1, %v407_v2  ;;  %v524_v4 = vpop.f32.mrb[5].mxu0 }
 0x29c   :  { %v410_v5 = vpop.f32.mrb[6].mxu0 }
 0x29d   :  { %v411_v6 = vadd.f32 %v466_v1, %v410_v5  ;;  %v525_v7 = vpop.f32.mrb[7].mxu0  ;;  %v417_v8 = vsel %vm416_vm2, %v408_v3, -inf }
 0x29e   :  { %419 = vmax.xlane.f32.xlu0 %v417_v8 }
 0x29f   :  { %v418_v9 = vsel %vm416_vm2, %v411_v6, -inf }
 0x2a2   :  { %421 = vmax.xlane.f32.xlu0 %v418_v9 }
 0x32b   :  { %v420_v10 = vpop.xlane.xlu0 %419 }
 0x32c   :  { %v423_v11 = vsub.f32 %v417_v8, %v420_v10 }
 0x32e   :  { %v425_v12 = vmul.f32 1.442695, %v423_v11 }
 0x32f   :  { %v422_v13 = vpop.xlane.xlu0 %421 }
 0x330   :  { %560 = vpow2.f32 %v425_v12  ;;  %v424_v14 = vsub.f32 %v418_v9, %v422_v13 }
 0x332   :  { %v427_v15 = vmul.f32 1.442695, %v424_v14 }
 0x334   :  { %562 = vpow2.f32 %v427_v15 }
 0x33a   :  { %v561_v16 = vpop.eup %560 }
 0x33b   :  { %429 = vadd.xlane.f32.xlu1 %v561_v16 }
 0x33e   :  { %v563_v17 = vpop.eup %562 }
 0x33f   :  { %431 = vadd.xlane.f32.xlu1 %v563_v17 }
 0x3c8   :  { %v430_v18 = vpop.xlane.xlu1 %429 }
 0x3c9   :  { %564 = vrcp.f32 %v430_v18 }
 0x3cc   :  { %v432_v19 = vpop.xlane.xlu1 %431 }
 0x3cd   :  { %566 = vrcp.f32 %v432_v19 }
 0x3d3   :  { %v565_v20 = vpop.eup %564 }
 0x3d4   :  { %v435_v21 = vmul.f32 %v565_v20, %v561_v16 }
 0x3d6   :  { %437 = vst [vmem:[%s720_s7] sm:$0xff] %v435_v21 }
 0x3d7   :  { %v567_v22 = vpop.eup %566 }
 0x3d8   :  { %v436_v23 = vmul.f32 %v567_v22, %v563_v17 }
 0x3da   :  { %438 = vst [vmem:[%s720_s7 + $0x8] sm:$0xff] %v436_v23 }

</bundles_post_ra>
